<compile_context>
chip_gen: v7x
topology: tpu7x:2x2x1
jax: 0.10.0
libtpu: 0.0.40
codegen_flags: <defaults>
</compile_context>

<pallas_src>
import functools

import jax
import jax.numpy as jnp
from jax.experimental import pallas as pl
from jax.experimental.pallas import tpu as pltpu


def _gem_kernel(p_ref, x_ref, o_ref, *, eps, inv_hw):
    # p_ref: (1,) SMEM scalar; x_ref: (1, HW, TILE_C) VMEM; o_ref: (1, 1, TILE_C) VMEM
    p = p_ref[0]
    inv_p = 1.0 / p                                   # hoisted scalar epilogue work
    x = x_ref[...].astype(jnp.float32)
    x = jnp.maximum(x, eps)                           # clamp(min=eps): x > 0, log is safe
    xp = jnp.exp(p * jnp.log(x))                      # x ** p with a runtime exponent
    m = jnp.sum(xp, axis=1, keepdims=True) * inv_hw   # mean over the full (H, W) window
    o_ref[...] = jnp.exp(jnp.log(m) * inv_p).astype(o_ref.dtype)  # m ** (1/p)


def _pick_tile_c(C, HW, bytes_per_elem=4, budget_bytes=4 * 1024 * 1024):
    """Largest multiple-of-128 divisor of C whose (HW, TILE_C) block fits the budget."""
    if C % 128 != 0:
        return C                                      # small / odd C: single lane block
    tile = 128
    cand = 128
    while cand <= C:
        if C % cand == 0 and cand * HW * bytes_per_elem <= budget_bytes:
            tile = cand
        cand += 128
    return tile


def gem_forward(x, p, eps=1e-6):
    """GeM pooling. x: (N, C, H, W), p: (1,) float32 -> (N, C, 1, 1)."""
    N, C, H, W = x.shape
    HW = H * W
    # Channels-last so C maps onto the 128-wide lane axis inside the kernel.
    x_nlc = jnp.transpose(x, (0, 2, 3, 1)).reshape(N, HW, C)

    tile_c = _pick_tile_c(C, HW)
    grid = (N, C // tile_c)

    cost = pl.CostEstimate(
        flops=3 * N * C * HW,
        transcendentals=2 * N * C * HW + 2 * N * C,   # log+exp per element + epilogue
        bytes_accessed=4 * N * C * HW + 4 * N * C,
    )

    out = pl.pallas_call(
        functools.partial(_gem_kernel, eps=eps, inv_hw=1.0 / HW),
        out_shape=jax.ShapeDtypeStruct((N, 1, C), x.dtype),
        grid=grid,
        in_specs=[
            pl.BlockSpec(memory_space=pltpu.SMEM),                  # p (scalar param)
            pl.BlockSpec((1, HW, tile_c), lambda n, c: (n, 0, c)),  # input tile
        ],
        out_specs=pl.BlockSpec((1, 1, tile_c), lambda n, c: (n, 0, c)),
        compiler_params=pltpu.CompilerParams(
            dimension_semantics=("parallel", "parallel"),
        ),
        cost_estimate=cost,
    )(p, x_nlc)

    return out.reshape(N, C, 1, 1)


if __name__ == "__main__":
    key = jax.random.PRNGKey(0)
    N, C, H, W = 2, 4, 16, 16

    x = jax.random.normal(key, (N, C, H, W), dtype=jnp.float32)
    # Deterministic parameter init matching nn.Parameter(torch.ones(1) * 3)
    p = jnp.ones((1,), dtype=jnp.float32) * 3.0
    eps = 1e-6

    y = gem_forward(x, p, eps)
    y = jax.block_until_ready(y)

    # Pure-JAX reference (clamp -> pow(p) -> spatial mean -> pow(1/p))
    ref = jnp.mean(jnp.maximum(x, eps) ** p[0], axis=(2, 3), keepdims=True) ** (1.0 / p[0])
    assert y.shape == (N, C, 1, 1), y.shape
    assert jnp.allclose(y, ref, rtol=1e-5, atol=1e-5), (y, ref)

    print("KERNEL_OK")
</pallas_src>

<mosaic_0001>
module attributes {stable_mosaic.version = 11 : i64} {
  func.func @_gem_kernel(%arg0: i32, %arg1: i32, %arg2: memref<1xf32, #tpu.memory_space<smem>>, %arg3: memref<1x256x4xf32, #tpu.memory_space<vmem>>, %arg4: memref<1x1x4xf32, #tpu.memory_space<vmem>>) attributes {dimension_semantics = [#tpu.dimension_semantics<parallel>, #tpu.dimension_semantics<parallel>], iteration_bounds = array<i64: 2, 1>, scalar_prefetch = 0 : i64, scratch_operands = 0 : i64, tpu.core_type = #tpu.core_type<tc>, window_params = [{transform_indices = @transform_0, window_bounds = array<i64: 1>}, {transform_indices = @transform_1, window_bounds = array<i64: 1, 256, 4>}, {transform_indices = @transform_2, window_bounds = array<i64: 1, 1, 4>}]} {
    %c0 = arith.constant 0 : index
    %0 = memref.load %arg2[%c0] : memref<1xf32, #tpu.memory_space<smem>>
    %cst = arith.constant 1.000000e+00 : f32
    %1 = arith.divf %cst, %0 : f32
    %c0_0 = arith.constant 0 : index
    %c0_1 = arith.constant 0 : index
    %c0_2 = arith.constant 0 : index
    %2 = vector.load %arg3[%c0_0, %c0_1, %c0_2] : memref<1x256x4xf32, #tpu.memory_space<vmem>>, vector<1x256x4xf32>
    %cst_3 = arith.constant 9.99999997E-7 : f32
    %3 = vector.broadcast %cst_3 : f32 to vector<1x256x4xf32>
    %4 = arith.maximumf %2, %3 : vector<1x256x4xf32>
    %5 = math.log %4 : vector<1x256x4xf32>
    %6 = vector.broadcast %0 : f32 to vector<1x256x4xf32>
    %7 = arith.mulf %6, %5 : vector<1x256x4xf32>
    %8 = math.exp %7 : vector<1x256x4xf32>
    %cst_4 = arith.constant dense<0.000000e+00> : vector<1x4xf32>
    %9 = vector.multi_reduction <add>, %8, %cst_4 [1] : vector<1x256x4xf32> to vector<1x4xf32>
    %10 = vector.shape_cast %9 : vector<1x4xf32> to vector<1x1x4xf32>
    %cst_5 = arith.constant 3.906250e-03 : f32
    %11 = vector.broadcast %cst_5 : f32 to vector<1x1x4xf32>
    %12 = arith.mulf %10, %11 : vector<1x1x4xf32>
    %13 = math.log %12 : vector<1x1x4xf32>
    %14 = vector.broadcast %1 : f32 to vector<1x1x4xf32>
    %15 = arith.mulf %13, %14 : vector<1x1x4xf32>
    %16 = math.exp %15 : vector<1x1x4xf32>
    %c0_6 = arith.constant 0 : index
    %c0_7 = arith.constant 0 : index
    %c0_8 = arith.constant 0 : index
    %17 = vector.load %arg4[%c0_6, %c0_7, %c0_8] : memref<1x1x4xf32, #tpu.memory_space<vmem>>, vector<1x1x4xf32>
    tpu.vector_store %arg4[%c0_6, %c0_7, %c0_8], %16 {strides = array<i32>} : memref<1x1x4xf32, #tpu.memory_space<vmem>>, vector<1x1x4xf32>,
    return
  }
  func.func @transform_0(%arg0: i32, %arg1: i32) -> i32 {
    %c0_i32 = arith.constant 0 : i32
    %c0_i32_0 = arith.constant 0 : i32
    return %c0_i32 : i32
  }
  func.func @transform_1(%arg0: i32, %arg1: i32) -> (i32, i32, i32) {
    %c0_i32 = arith.constant 0 : i32
    %c0_i32_0 = arith.constant 0 : i32
    return %arg0, %c0_i32, %arg1 : i32, i32, i32
  }
  func.func @transform_2(%arg0: i32, %arg1: i32) -> (i32, i32, i32) {
    %c0_i32 = arith.constant 0 : i32
    %c0_i32_0 = arith.constant 0 : i32
    return %arg0, %c0_i32, %arg1 : i32, i32, i32
  }
}

</mosaic_0001>

<bundles_post_ra>
// kernel: tpu_custom_call.1
= control target key start
LH: loop header
LB: loop body
LE: loop exit
PB: predicated region body
PF: predicated region fallthrough
CT: control target
= control target key end

     0   :  { %s1073_s0 = inlined_call_operand.<no memory space> [shape: f32[1], index: 0, kind: input, shape index: {}]   ;;  %s1074_s1 = inlined_call_operand.vmem [shape: f32[2,256,4], index: 1, kind: input, shape index: {}]   ;;  %s1075_s2 = inlined_call_operand.hbm [shape: f32[2,1,4], index: 2, kind: output, shape index: {}]  }
   0x1   :  { %7 = sst [smem:[#allocation2]] %s1073_s0 }
   0x2   :  { %8 = vsyncpa [#allocation4], 0 }
   0x3   :  { %10 = vsyncpa [#allocation4 + $0x1], 0  ;;  %s860_s11 = smov 0   ;;  %s862_s12 = smov 0  }
   0x4   :  { %s864_s13 = smov 0   ;;  %s866_s14 = smov 0  }
   0x5   :  { %s868_s15 = smov 0   ;;  %s870_s16 = smov 0  }
   0x6 LB: > { %s559_s0 = sadd.s32 4294967295, %s839_s16   ;;  %s560_s17 = sadd.s32 4294967294, %s839_s16   ;;  %s839_s16 = sphi %s870_s16, %s16_s16   ;;  %s835_s15 = sphi %s868_s15, %s1082_s15   ;;  %s831_s14 = sphi %s866_s14, %s1081_s14   ;;  %s827_s13 = sphi %s864_s13, %s1080_s13   ;;  %s823_s12 = sphi %s862_s12, %s1079_s12   ;;  %s819_s11 = sphi %s860_s11, %s1078_s11  }
   0x7   : > { %s28_s18 = sadd.s32 1, %s835_s15  ;;  %s86_s19 = sadd.s32 1, %s827_s13 }
   0x8   : > { %p30_p0 = scmp.ge.s32.totalorder %s28_s18, 2  ;;  %p96_p1 = scmp.ne.s32.totalorder %s827_s13, %s823_s12 }
   0x9   : > { %p97_p2 = scmp.eq.s32.totalorder %s559_s0, 1  ;;  %p102_p3 = scmp.ne.s32.totalorder %s823_s12, %s819_s11 }
   0xa   : > { %s1084_s18 = smov (%p30_p0, %s28_s18), 0  ;;  %p103_p5 = scmp.eq.s32.totalorder %s560_s17, 1 }
   0xb   : > { %p900_p4 = por %p97_p2, %p96_p1  ;;  %s81_s21 = ssub.s32 %s835_s15, %s1084_s18 }
   0xc   : > { %p563_p6 = scmp.ge.s32.totalorder %s839_s16, 1  ;;  %p84_p7 = scmp.eq.s32.totalorder %s81_s21, 0 }
   0xd   : > { %p907_p8 = por %p103_p5, %p102_p3  ;;  %p135_p9 = scmp.lt.s32.totalorder %s839_s16, 3 }
   0xe   : > { %s913_s23 = scalar_select %p84_p7, %s827_s13, %s86_s19  }
   0xf   : > { %p136_p10 = pnand %p563_p6, %p135_p9 }
  0x10   : > { %p159_p11 = scmp.lt.s32.totalorder (!%p136_p10), %s831_s14, 1  ;;  %s167_s24 = sld [smem:[#allocation2]] (!%p136_p10)  ;;  %vm396_vm0 = vcmask (!%p136_p10), 31744   ;;  %vm473_vm1 = vcmask (!%p136_p10), 24576  }
  0x11   : > { %139 = sbr.rel (%p136_p10) target bundleno = 179 (0xb3), region = 28  ;;  %s157_s3 = sand.u32 (!%p136_p10), 1, %s823_s12  }
  0x12   : > { %s566_s4 = sshll.u32 (!%p136_p10), %s831_s14, 4  ;;  %s158_s5 = scalar_lea.vmem (!%p136_p10), [#allocation3], %s157_s3 }
  0x13   : > { %s489_s6 = sshll.u32 (!%p136_p10), %s158_s5, 4  ;;  %s1026_s9 = scalar_lea.hbm (!%p136_p10), %s1075_s2, %s566_s4  ;;  %s1028_s6 = int_to_ptr.vmem [resolvable:$true] %s489_s6 }
  0x14   : > { %s476_s10 = scalar_lea.sflag (!%p136_p10), [#allocation4], %s157_s3  ;;  %s761_s0 = scalar_lea.vmem (!%p136_p10), %s1028_s6, 16 }
  0x15   : > { %p762_p12 = scmp.ne.s32.totalorder (!%p136_p10), %s1028_s6, %s761_s0 }
  0x16   : > { %v922_v0 = vstv (!%p136_p10), %s167_s24 }
  0x17   : > { %627 = vrcp.f32 (!%p136_p10), %v922_v0  ;;  %p763_p13 = pnand (!%p136_p10), %p762_p12, %p900_p4 }
  0x18   : > { %s160_s25 = scalar_select %p159_p11, %s831_s14, 1 }
  0x19   : > { %p764_p0 = pneg %p763_p13  ;;  %s841_s14 = smov [#allocation3]  }
  0x1a   : > { %s569_s26 = sshll.u32 %s160_s25, 8  ;;  %s765_s17 = sshll.u32 %s841_s14, 4  ;;  %s766_s17 = int_to_ptr.vmem [resolvable:$false] %s765_s17 }
  0x1b   : > { %s920_s29 = scalar_lea.vmem %s1074_s1, %s569_s26  ;;  %s767_s19 = scalar_lea.vmem %s766_s17, 32 }
  0x1c   : > { %v171_v1 = vld [vmem:[%s920_s29] sm:$0xff]  ;;  %v172_v2 = vld [vmem:[%s920_s29 + $0x8] sm:$0xff]  ;;  %v173_v3 = vld [vmem:[%s920_s29 + $0x10] sm:$0xff]  ;;  %p768_p1 = scmp.lt.s32.totalorder %s1028_s6, %s766_s17  ;;  %p769_p2 = scmp.lt.s32.totalorder %s767_s19, %s761_s0 }
  0x1d   : > { %v203_v4 = vmax.f32 %v171_v1, 1e-06  ;;  %v174_v5 = vld [vmem:[%s920_s29 + $0x18] sm:$0xff]  ;;  %v204_v6 = vmax.f32 %v172_v2, 1e-06  ;;  %v175_v8 = vld [vmem:[%s920_s29 + $0x20] sm:$0xff] }
  0x1e   : > { %v205_v7 = vmax.f32 %v173_v3, 1e-06  ;;  %v206_v9 = vmax.f32 %v174_v5, 1e-06  ;;  %v176_v10 = vld [vmem:[%s920_s29 + $0x28] sm:$0xff]  ;;  %v177_v13 = vld [vmem:[%s920_s29 + $0x30] sm:$0xff]  ;;  %p770_p3 = por %p769_p2, %p768_p1 }
  0x1f   : > { %629 = vlog2.f32 %v203_v4  ;;  %v207_v12 = vmax.f32 %v175_v8, 1e-06  ;;  %v208_v14 = vmax.f32 %v176_v10, 1e-06  ;;  %v178_v15 = vld [vmem:[%s920_s29 + $0x38] sm:$0xff]  ;;  %v179_v17 = vld [vmem:[%s920_s29 + $0x40] sm:$0xff] }
  0x20   : > { %631 = vlog2.f32 %v204_v6  ;;  %v209_v16 = vmax.f32 %v177_v13, 1e-06  ;;  %v210_v18 = vmax.f32 %v178_v15, 1e-06  ;;  %v180_v19 = vld [vmem:[%s920_s29 + $0x48] sm:$0xff]  ;;  %v181_v23 = vld [vmem:[%s920_s29 + $0x50] sm:$0xff]  ;;  %p771_p5 = pnand %p770_p3, %p764_p0 }
  0x21   : > { %v628_v11 = vpop.eup %627  ;;  %633 = vlog2.f32 %v205_v7  ;;  %v211_v21 = vmax.f32 %v179_v17, 1e-06  ;;  %v182_v25 = vld [vmem:[%s920_s29 + $0x58] sm:$0xff]  ;;  %v212_v26 = vmax.f32 %v180_v19, 1e-06  ;;  %v183_v27 = vld [vmem:[%s920_s29 + $0x60] sm:$0xff] }
  0x22   : > { %570 = vpush %v628_v11  ;;  %635 = vlog2.f32 %v206_v9  ;;  %v184_v30 = vld [vmem:[%s920_s29 + $0x68] sm:$0xff]  ;;  %v213_v31 = vmax.f32 %v181_v23, 1e-06  ;;  %v185_v33 = vld [vmem:[%s920_s29 + $0x70] sm:$0xff]  ;;  %v214_v34 = vmax.f32 %v182_v25, 1e-06 }
  0x23   : > { %637 = vlog2.f32 %v207_v12  ;;  %v186_v37 = vld [vmem:[%s920_s29 + $0x78] sm:$0xff]  ;;  %v215_v38 = vmax.f32 %v183_v27, 1e-06  ;;  %v187_v39 = vld [vmem:[%s920_s29 + $0x80] sm:$0xff]  ;;  %v216_v40 = vmax.f32 %v184_v30, 1e-06 }
  0x24   : > { %639 = vlog2.f32 %v208_v14  ;;  %v217_v44 = vmax.f32 %v185_v33, 1e-06  ;;  %v218_v46 = vmax.f32 %v186_v37, 1e-06  ;;  %v219_v50 = vmax.f32 %v187_v39, 1e-06 }
  0x25   : > { %641 = vlog2.f32 %v209_v16  ;;  %v188_v51 = vld [vmem:[%s920_s29 + $0x88] sm:$0xff]  ;;  %v189_v57 = vld [vmem:[%s920_s29 + $0x90] sm:$0xff]  ;;  %v190_v63 = vld [vmem:[%s920_s29 + $0x98] sm:$0xff] }
  0x26   : > { %643 = vlog2.f32 %v210_v18  ;;  %v220_v62 = vmax.f32 %v188_v51, 1e-06  ;;  %v221_v5 = vmax.f32 %v189_v57, 1e-06  ;;  %v191_v6 = vld [vmem:[%s920_s29 + $0xa0] sm:$0xff]  ;;  %v192_v13 = vld [vmem:[%s920_s29 + $0xa8] sm:$0xff] }
  0x27   : > { %645 = vlog2.f32 %v211_v21  ;;  %v222_v11 = vmax.f32 %v190_v63, 1e-06  ;;  %v223_v18 = vmax.f32 %v191_v6, 1e-06  ;;  %v224_v25 = vmax.f32 %v192_v13, 1e-06 }
  0x28   : > { %647 = vlog2.f32 %v212_v26  ;;  %v194_v33 = vld [vmem:[%s920_s29 + $0xb8] sm:$0xff]  ;;  %v197_v57 = vld [vmem:[%s920_s29 + $0xd0] sm:$0xff] }
  0x29   : > { %v630_v20 = vpop.eup %629  ;;  %649 = vlog2.f32 %v213_v31 }
  0x2a   : > { %v632_v22 = vpop.eup %631  ;;  %v236_v28 = vmul.f32 0.6931472, %v630_v20  ;;  %651 = vlog2.f32 %v214_v34  ;;  %v193_v20 = vld [vmem:[%s920_s29 + $0xb0] sm:$0xff]  ;;  %v195_v34 = vld [vmem:[%s920_s29 + $0xc0] sm:$0xff] }
  0x2b   : > { %v634_v24 = vpop.eup %633  ;;  %v238_v32 = vmul.f32 0.6931472, %v632_v22  ;;  %653 = vlog2.f32 %v215_v38  ;;  %v225_v31 = vmax.f32 %v193_v20, 1e-06 }
  0x2c   : > { %v636_v29 = vpop.eup %635  ;;  %v240_v35 = vmul.f32 0.6931472, %v634_v24  ;;  %v300_v42 = vmul.f32 %v236_v28, %v922_v0  ;;  %655 = vlog2.f32 %v216_v40 }
  0x2d   : > { %v638_v36 = vpop.eup %637  ;;  %v242_v41 = vmul.f32 0.6931472, %v636_v29  ;;  %v301_v45 = vmul.f32 %v238_v32, %v922_v0  ;;  %657 = vlog2.f32 %v217_v44  ;;  %v226_v44 = vmax.f32 %v194_v33, 1e-06 }
  0x2e   : > { %v640_v43 = vpop.eup %639  ;;  %v244_v47 = vmul.f32 0.6931472, %v638_v36  ;;  %v302_v48 = vmul.f32 %v240_v35, %v922_v0  ;;  %v332_v54 = vmul.f32 1.442695, %v300_v42  ;;  %659 = vlog2.f32 %v218_v46 }
  0x2f   : > { %v642_v49 = vpop.eup %641  ;;  %v246_v52 = vmul.f32 0.6931472, %v640_v43  ;;  %v303_v53 = vmul.f32 %v242_v41, %v922_v0  ;;  %v334_v56 = vmul.f32 1.442695, %v301_v45  ;;  %661 = vlog2.f32 %v219_v50 }
  0x30   : > { %v644_v55 = vpop.eup %643  ;;  %v248_v58 = vmul.f32 0.6931472, %v642_v49  ;;  %v304_v59 = vmul.f32 %v244_v47, %v922_v0  ;;  %v336_v60 = vmul.f32 1.442695, %v302_v48  ;;  %663 = vpow2.f32 %v332_v54  ;;  %v196_v47 = vld [vmem:[%s920_s29 + $0xc8] sm:$0xff] }
  0x31   : > { %v646_v61 = vpop.eup %645  ;;  %v250_v1 = vmul.f32 0.6931472, %v644_v55  ;;  %v305_v2 = vmul.f32 %v246_v52, %v922_v0  ;;  %v338_v3 = vmul.f32 1.442695, %v303_v53  ;;  %665 = vpow2.f32 %v334_v56 }
  0x32   : > { %v648_v4 = vpop.eup %647  ;;  %v252_v7 = vmul.f32 0.6931472, %v646_v61  ;;  %v306_v8 = vmul.f32 %v248_v58, %v922_v0  ;;  %667 = vpow2.f32 %v336_v60  ;;  %v340_v9 = vmul.f32 1.442695, %v304_v59 }
  0x33   : > { %v650_v10 = vpop.eup %649  ;;  %669 = vlog2.f32 %v220_v62  ;;  %v254_v14 = vmul.f32 0.6931472, %v648_v4  ;;  %v307_v15 = vmul.f32 %v250_v1, %v922_v0  ;;  %v342_v16 = vmul.f32 1.442695, %v305_v2 }
  0x34   : > { %v652_v12 = vpop.eup %651  ;;  %671 = vpow2.f32 %v338_v3  ;;  %v256_v21 = vmul.f32 0.6931472, %v650_v10  ;;  %v308_v22 = vmul.f32 %v252_v7, %v922_v0  ;;  %v344_v23 = vmul.f32 1.442695, %v306_v8  ;;  %v198_v3 = vld [vmem:[%s920_s29 + $0xd8] sm:$0xff] }
  0x35   : > { %v654_v17 = vpop.eup %653  ;;  %673 = vlog2.f32 %v221_v5  ;;  %v258_v27 = vmul.f32 0.6931472, %v652_v12  ;;  %v309_v28 = vmul.f32 %v254_v14, %v922_v0  ;;  %v346_v29 = vmul.f32 1.442695, %v307_v15  ;;  %v199_v12 = vld [vmem:[%s920_s29 + $0xe0] sm:$0xff] }
  0x36   : > { %v656_v19 = vpop.eup %655  ;;  %675 = vpow2.f32 %v340_v9  ;;  %v260_v35 = vmul.f32 0.6931472, %v654_v17  ;;  %v310_v36 = vmul.f32 %v256_v21, %v922_v0  ;;  %v348_v37 = vmul.f32 1.442695, %v308_v22  ;;  %v200_v21 = vld [vmem:[%s920_s29 + $0xe8] sm:$0xff] }
  0x37   : > { %v658_v24 = vpop.eup %657  ;;  %677 = vlog2.f32 %v222_v11  ;;  %v262_v40 = vmul.f32 0.6931472, %v656_v19  ;;  %v311_v41 = vmul.f32 %v258_v27, %v922_v0  ;;  %v350_v42 = vmul.f32 1.442695, %v309_v28 }
  0x38   : > { %v660_v26 = vpop.eup %659  ;;  %679 = vpow2.f32 %v342_v16  ;;  %v227_v45 = vmax.f32 %v195_v34, 1e-06  ;;  %v264_v48 = vmul.f32 0.6931472, %v658_v24  ;;  %v312_v49 = vmul.f32 %v260_v35, %v922_v0 }
  0x39   : > { %v662_v30 = vpop.eup %661  ;;  %681 = vlog2.f32 %v223_v18  ;;  %v352_v50 = vmul.f32 1.442695, %v310_v36  ;;  %v266_v52 = vmul.f32 0.6931472, %v660_v26  ;;  %v313_v58 = vmul.f32 %v262_v40, %v922_v0 }
  0x3a   : > { %v664_v32 = vpop.eup %663  ;;  %683 = vpow2.f32 %v344_v23  ;;  %v354_v59 = vmul.f32 1.442695, %v311_v41  ;;  %v228_v62 = vmax.f32 %v196_v47, 1e-06  ;;  %v268_v63 = vmul.f32 0.6931472, %v662_v30 }
  0x3b   : > { %v666_v38 = vpop.eup %665  ;;  %685 = vlog2.f32 %v224_v25  ;;  %v397_v53 = vsel %vm396_vm0, %v664_v32, 0.0  ;;  %v314_v4 = vmul.f32 %v264_v48, %v922_v0  ;;  %v356_v5 = vmul.f32 1.442695, %v312_v49  ;;  %v201_v30 = vld [vmem:[%s920_s29 + $0xf0] sm:$0xff] }
  0x3c   : > { %v668_v39 = vpop.eup %667  ;;  %687 = vpow2.f32 %v346_v29  ;;  %v398_v54 = vsel %vm396_vm0, %v666_v38, 0.0  ;;  %v229_v8 = vmax.f32 %v197_v57, 1e-06  ;;  %v315_v13 = vmul.f32 %v266_v52, %v922_v0  ;;  %v202_v38 = vld [vmem:[%s920_s29 + $0xf8] sm:$0xff] }
  0x3d   : > { %v670_v43 = vpop.eup %669  ;;  %689 = vlog2.f32 %v225_v31  ;;  %v400_v55 = vsel %vm396_vm0, %v668_v39, 0.0  ;;  %v399_v60 = vadd.f32 %v398_v54, %v397_v53  ;;  %v358_v14 = vmul.f32 1.442695, %v313_v58 }
  0x3e   : > { %v672_v46 = vpop.eup %671  ;;  %691 = vpow2.f32 %v348_v37  ;;  %v270_v9 = vmul.f32 0.6931472, %v670_v43  ;;  %v230_v17 = vmax.f32 %v198_v3, 1e-06  ;;  %v316_v22 = vmul.f32 %v268_v63, %v922_v0 }
  0x3f   : > { %v674_v51 = vpop.eup %673  ;;  %693 = vpow2.f32 %v350_v42  ;;  %v402_v1 = vsel %vm396_vm0, %v672_v46, 0.0  ;;  %v401_v6 = vadd.f32 %v400_v55, %v399_v60  ;;  %v360_v23 = vmul.f32 1.442695, %v314_v4 }
  0x40   : > { %v676_v56 = vpop.eup %675  ;;  %695 = vlog2.f32 %v226_v44  ;;  %v272_v18 = vmul.f32 0.6931472, %v674_v51  ;;  %v231_v26 = vmax.f32 %v199_v12, 1e-06  ;;  %v317_v31 = vmul.f32 %v270_v9, %v922_v0 }
  0x41   : > { %v678_v61 = vpop.eup %677  ;;  %697 = vpow2.f32 %v352_v50  ;;  %v404_v10 = vsel %vm396_vm0, %v676_v56, 0.0  ;;  %v403_v15 = vadd.f32 %v402_v1, %v401_v6  ;;  %v362_v32 = vmul.f32 1.442695, %v315_v13 }
  0x42   : > { %v680_v2 = vpop.eup %679  ;;  %699 = vlog2.f32 %v227_v45  ;;  %v274_v27 = vmul.f32 0.6931472, %v678_v61  ;;  %v232_v34 = vmax.f32 %v200_v21, 1e-06  ;;  %v318_v39 = vmul.f32 %v272_v18, %v922_v0 }
  0x43   : > { %v682_v7 = vpop.eup %681  ;;  %701 = vpow2.f32 %v354_v59  ;;  %v406_v19 = vsel %vm396_vm0, %v680_v2, 0.0  ;;  %v405_v24 = vadd.f32 %v404_v10, %v403_v15  ;;  %v364_v40 = vmul.f32 1.442695, %v316_v22 }
  0x44   : > { %v684_v11 = vpop.eup %683  ;;  %703 = vlog2.f32 %v228_v62  ;;  %v276_v35 = vmul.f32 0.6931472, %v682_v7  ;;  %v233_v43 = vmax.f32 %v201_v30, 1e-06  ;;  %v319_v47 = vmul.f32 %v274_v27, %v922_v0 }
  0x45   : > { %v686_v16 = vpop.eup %685  ;;  %705 = vpow2.f32 %v356_v5  ;;  %v408_v28 = vsel %vm396_vm0, %v684_v11, 0.0  ;;  %v407_v33 = vadd.f32 %v406_v19, %v405_v24  ;;  %v366_v48 = vmul.f32 1.442695, %v317_v31 }
  0x46   : > { %v688_v20 = vpop.eup %687  ;;  %707 = vlog2.f32 %v229_v8  ;;  %v278_v44 = vmul.f32 0.6931472, %v686_v16  ;;  %v234_v51 = vmax.f32 %v202_v38, 1e-06  ;;  %v320_v55 = vmul.f32 %v276_v35, %v922_v0 }
  0x47   : > { %v690_v25 = vpop.eup %689  ;;  %709 = vpow2.f32 %v358_v14  ;;  %v410_v36 = vsel %vm396_vm0, %v688_v20, 0.0  ;;  %v409_v41 = vadd.f32 %v408_v28, %v407_v33  ;;  %v368_v56 = vmul.f32 1.442695, %v318_v39 }
  0x48   : > { %v692_v29 = vpop.eup %691  ;;  %711 = vlog2.f32 %v230_v17  ;;  %v280_v52 = vmul.f32 0.6931472, %v690_v25  ;;  %v321_v62 = vmul.f32 %v278_v44, %v922_v0  ;;  %v370_v63 = vmul.f32 1.442695, %v319_v47 }
  0x49   : > { %v694_v37 = vpop.eup %693  ;;  %713 = vpow2.f32 %v360_v23  ;;  %v412_v45 = vsel %vm396_vm0, %v692_v29, 0.0  ;;  %v411_v49 = vadd.f32 %v410_v36, %v409_v41  ;;  %v372_v7 = vmul.f32 1.442695, %v320_v55 }
  0x4a   : > { %v696_v42 = vpop.eup %695  ;;  %715 = vlog2.f32 %v231_v26  ;;  %v414_v53 = vsel %vm396_vm0, %v694_v37, 0.0  ;;  %v322_v6 = vmul.f32 %v280_v52, %v922_v0  ;;  %v374_v14 = vmul.f32 1.442695, %v321_v62 }
  0x4b   : > { %v698_v46 = vpop.eup %697  ;;  %717 = vpow2.f32 %v362_v32  ;;  %v413_v57 = vadd.f32 %v412_v45, %v411_v49  ;;  %v282_v59 = vmul.f32 0.6931472, %v696_v42 }
  0x4c   : > { %v700_v50 = vpop.eup %699  ;;  %719 = vlog2.f32 %v232_v34  ;;  %v416_v60 = vsel %vm396_vm0, %v698_v46, 0.0  ;;  %v376_v21 = vmul.f32 1.442695, %v322_v6 }
  0x4d   : > { %v702_v54 = vpop.eup %701  ;;  %721 = vpow2.f32 %v364_v40  ;;  %v415_v1 = vadd.f32 %v414_v53, %v413_v57  ;;  %v284_v3 = vmul.f32 0.6931472, %v700_v50  ;;  %v323_v13 = vmul.f32 %v282_v59, %v922_v0 }
  0x4e   : > { %v704_v58 = vpop.eup %703  ;;  %723 = vlog2.f32 %v233_v43  ;;  %v418_v4 = vsel %vm396_vm0, %v702_v54, 0.0 }
  0x4f   : > { %v706_v61 = vpop.eup %705  ;;  %725 = vpow2.f32 %v366_v48  ;;  %v417_v8 = vadd.f32 %v416_v60, %v415_v1  ;;  %v286_v10 = vmul.f32 0.6931472, %v704_v58  ;;  %v324_v20 = vmul.f32 %v284_v3, %v922_v0 }
  0x50   : > { %v708_v2 = vpop.eup %707  ;;  %727 = vlog2.f32 %v234_v51  ;;  %v420_v11 = vsel %vm396_vm0, %v706_v61, 0.0  ;;  %v378_v28 = vmul.f32 1.442695, %v323_v13 }
  0x51   : > { %v710_v5 = vpop.eup %709  ;;  %729 = vpow2.f32 %v368_v56  ;;  %v419_v15 = vadd.f32 %v418_v4, %v417_v8  ;;  %v288_v17 = vmul.f32 0.6931472, %v708_v2  ;;  %v325_v27 = vmul.f32 %v286_v10, %v922_v0 }
  0x52   : > { %v712_v9 = vpop.eup %711  ;;  %731 = vpow2.f32 %v370_v63  ;;  %v422_v18 = vsel %vm396_vm0, %v710_v5, 0.0  ;;  %v380_v35 = vmul.f32 1.442695, %v324_v20 }
  0x53   : > { %v714_v12 = vpop.eup %713  ;;  %733 = vpow2.f32 %v372_v7  ;;  %v421_v22 = vadd.f32 %v420_v11, %v419_v15  ;;  %v290_v24 = vmul.f32 0.6931472, %v712_v9  ;;  %v326_v34 = vmul.f32 %v288_v17, %v922_v0  ;;  %s571_s30 = spop %570 }
  0x54   : > { %v716_v16 = vpop.eup %715  ;;  %v424_v25 = vsel %vm396_vm0, %v714_v12, 0.0  ;;  %735 = vpow2.f32 %v374_v14  ;;  %v382_v42 = vmul.f32 1.442695, %v325_v27 }
  0x55   : > { %v718_v19 = vpop.eup %717  ;;  %v423_v29 = vadd.f32 %v422_v18, %v421_v22  ;;  %v292_v31 = vmul.f32 0.6931472, %v716_v16  ;;  %737 = vpow2.f32 %v376_v21  ;;  %v327_v41 = vmul.f32 %v290_v24, %v922_v0 }
  0x56   : > { %v720_v23 = vpop.eup %719  ;;  %v426_v32 = vsel %vm396_vm0, %v718_v19, 0.0  ;;  %739 = vpow2.f32 %v378_v28  ;;  %v384_v48 = vmul.f32 1.442695, %v326_v34 }
  0x57   : > { %v722_v26 = vpop.eup %721  ;;  %v425_v36 = vadd.f32 %v424_v25, %v423_v29  ;;  %v294_v38 = vmul.f32 0.6931472, %v720_v23  ;;  %v328_v47 = vmul.f32 %v292_v31, %v922_v0  ;;  %741 = vpow2.f32 %v380_v35 }
  0x58   : > { %v724_v30 = vpop.eup %723  ;;  %v428_v39 = vsel %vm396_vm0, %v722_v26, 0.0  ;;  %743 = vpow2.f32 %v382_v42  ;;  %v386_v54 = vmul.f32 1.442695, %v327_v41 }
  0x59   : > { %v726_v33 = vpop.eup %725  ;;  %v427_v43 = vadd.f32 %v426_v32, %v425_v36  ;;  %v296_v44 = vmul.f32 0.6931472, %v724_v30  ;;  %v329_v53 = vmul.f32 %v294_v38, %v922_v0  ;;  %745 = vpow2.f32 %v384_v48 }
  0x5a   : > { %v728_v37 = vpop.eup %727  ;;  %v430_v45 = vsel %vm396_vm0, %v726_v33, 0.0  ;;  %v388_v59 = vmul.f32 1.442695, %v328_v47  ;;  %747 = vpow2.f32 %v386_v54 }
  0x5b   : > { %v730_v40 = vpop.eup %729  ;;  %v429_v49 = vadd.f32 %v428_v39, %v427_v43  ;;  %v298_v50 = vmul.f32 0.6931472, %v728_v37  ;;  %v330_v58 = vmul.f32 %v296_v44, %v922_v0  ;;  %v390_v1 = vmul.f32 1.442695, %v329_v53 }
  0x5c   : > { %v732_v46 = vpop.eup %731  ;;  %v432_v51 = vsel %vm396_vm0, %v730_v40, 0.0  ;;  %749 = vpow2.f32 %v388_v59  ;;  %v469_v44 = vstv %s571_s30 }
  0x5d   : > { %v734_v52 = vpop.eup %733  ;;  %v431_v55 = vadd.f32 %v430_v45, %v429_v49  ;;  %v434_v56 = vsel %vm396_vm0, %v732_v46, 0.0  ;;  %v331_v63 = vmul.f32 %v298_v50, %v922_v0  ;;  %v392_v5 = vmul.f32 1.442695, %v330_v58 }
  0x5e   : > { %v736_v57 = vpop.eup %735  ;;  %v436_v61 = vsel %vm396_vm0, %v734_v52, 0.0  ;;  %751 = vpow2.f32 %v390_v1 }
  0x5f   : > { %v433_v60 = vadd.f32 %v432_v51, %v431_v55  ;;  %v738_v62 = vpop.eup %737  ;;  %v438_v3 = vsel %vm396_vm0, %v736_v57, 0.0  ;;  %v394_v9 = vmul.f32 1.442695, %v331_v63  ;;  %753 = vpow2.f32 %v392_v5 }
  0x60   : > { %v740_v4 = vpop.eup %739  ;;  %v440_v7 = vsel %vm396_vm0, %v738_v62, 0.0 }
  0x61   : > { %v435_v2 = vadd.f32 %v434_v56, %v433_v60  ;;  %v742_v8 = vpop.eup %741  ;;  %v442_v11 = vsel %vm396_vm0, %v740_v4, 0.0  ;;  %755 = vpow2.f32 %v394_v9 }
  0x62   : > { %v744_v12 = vpop.eup %743  ;;  %v444_v13 = vsel %vm396_vm0, %v742_v8, 0.0 }
  0x63   : > { %v437_v6 = vadd.f32 %v436_v61, %v435_v2  ;;  %v746_v14 = vpop.eup %745  ;;  %v446_v16 = vsel %vm396_vm0, %v744_v12, 0.0 }
  0x64   : > { %v748_v17 = vpop.eup %747  ;;  %v448_v19 = vsel %vm396_vm0, %v746_v14, 0.0 }
  0x65   : > { %v439_v10 = vadd.f32 %v438_v3, %v437_v6  ;;  %v450_v22 = vsel %vm396_vm0, %v748_v17, 0.0 }
  0x66   : > { %v750_v20 = vpop.eup %749 }
  0x67   : > { %v441_v0 = vadd.f32 %v440_v7, %v439_v10  ;;  %v452_v25 = vsel %vm396_vm0, %v750_v20, 0.0 }
  0x68   : > { %v752_v23 = vpop.eup %751 }
  0x69   : > { %v443_v15 = vadd.f32 %v442_v11, %v441_v0  ;;  %v754_v26 = vpop.eup %753  ;;  %v454_v28 = vsel %vm396_vm0, %v752_v23, 0.0 }
  0x6a   : > { %v456_v31 = vsel %vm396_vm0, %v754_v26, 0.0 }
  0x6b   : > { %v445_v18 = vadd.f32 %v444_v13, %v443_v15  ;;  %v756_v29 = vpop.eup %755 }
  0x6c   : > { %v458_v33 = vsel %vm396_vm0, %v756_v29, 0.0 }
  0x6d   : > { %v447_v21 = vadd.f32 %v446_v16, %v445_v18 }
  0x6f   : > { %v449_v24 = vadd.f32 %v448_v19, %v447_v21 }
  0x71   : > { %v451_v27 = vadd.f32 %v450_v22, %v449_v24 }
  0x73   : > { %v453_v30 = vadd.f32 %v452_v25, %v451_v27 }
  0x75   : > { %v455_v32 = vadd.f32 %v454_v28, %v453_v30 }
  0x77   : > { %v457_v34 = vadd.f32 %v456_v31, %v455_v32 }
  0x79   : > { %v459_v35 = vadd.f32 %v458_v33, %v457_v34 }
  0x7b   : > { %v460_v36 = vrot.slane %v459_v35, 4 }
  0x7d   : > { %v461_v37 = vadd.f32 %v460_v36, %v459_v35 }
  0x7f   : > { %v462_v38 = vrot.slane %v461_v37, 2 }
  0x81   : > { %v463_v39 = vadd.f32 %v462_v38, %v461_v37 }
  0x83   : > { %v464_v40 = vrot.slane %v463_v39, 1 }
  0x85   : > { %v465_v41 = vadd.f32 %v464_v40, %v463_v39 }
  0x87   : > { %v466_v42 = vmul.f32 0.00390625, %v465_v41 }
  0x89   : > { %757 = vlog2.f32 %v466_v42 }
  0x93   : > { %v758_v43 = vpop.eup %757 }
  0x94   : > { %v468_v45 = vmul.f32 0.6931472, %v758_v43 }
  0x96   : > { %v470_v46 = vmul.f32 %v469_v44, %v468_v45 }
  0x98   : > { %v471_v47 = vmul.f32 1.442695, %v470_v46 }
  0x9a   : > { %759 = vpow2.f32 %v471_v47 }
  0xa4   : > { %v760_v48 = vpop.eup %759 }
  0xa5   : > { %474 = vst.msk [vmem:[%s158_s5] sm:$0x1] %vm473_vm1, %v760_v48 }
  0xa6   : > { %774 = shalt.err (!%p771_p5)
}
  0xa7   : > { %s775_s21 = scalar_lea.hbm %s1026_s9, 16  ;;  %s779_s26 = scalar_lea.hbm %s1075_s2, 32 }
  0xa8   : > { %p776_p6 = scmp.ne.s32.totalorder %s1026_s9, %s775_s21  ;;  %p780_p10 = scmp.lt.u32.totalorder %s1026_s9, %s1075_s2 }
  0xa9   : > { %p781_p11 = scmp.lt.u32.totalorder %s779_s26, %s775_s21  ;;  %p783_p13 = scmp.lt.u32.totalorder %s775_s21, %s1026_s9 }
  0xaa   : > { %p777_p7 = pnand %p776_p6, %p900_p4 }
  0xab   : > { %p782_p12 = por %p781_p11, %p780_p10 }
  0xac   : > { %p778_p9 = pneg %p777_p7 }
  0xad   : > { %p784_p0 = por %p783_p13, %p782_p12 }
  0xaf   : > { %p785_p1 = pnand %p784_p0, %p778_p9 }
  0xb1   : > { %788 = shalt.err (!%p785_p1)
}
  0xb2   : > { %572 = dma.vmem_to_hbm [thread:$0]  (%p900_p4), %s1028_s6, 16, %s1026_s9, %s476_s10  }
  0xb3 PF: > { %p578_p2 = scmp.ge.s32.totalorder %s839_s16, 2  ;;  %s501_s29 = sand.u32 1, %s819_s11  }
  0xb4   : > { %s502_s30 = scalar_lea.sflag [#allocation4], %s501_s29 }
  0xb5   : > { %p575_p3 = pnand %p578_p2, %p907_p8 }
  0xb7   : > { %814 = dma.done.wait (!%p575_p3), %s502_s30, 16  }
  0xb8   : > { %816 = vsyncadd (!%p575_p3), %s502_s30, 4294967280  ;;  %s16_s16 = sadd.s32 1, %s839_s16   ;;  %s1078_s11 = smov %s823_s12 }
  0xb9   : > { %p13_p5 = scmp.ge.s32.totalorder %s16_s16, 4   ;;  %s1079_s12 = smov %s827_s13 }
  0xba   : > { %s1080_s13 = smov %s913_s23  ;;  %s1081_s14 = smov %s835_s15 }
  0xbb   : > { %s1082_s15 = smov %s1084_s18  ;;  %15 = sbr.rel (!%p13_p5) target bundleno = 6 (0x6), region = 63 }
  0xc2   :  { %506 = vsyncpa [#allocation4], 1 }
  0xc3   :  { %508 = vsyncpa [#allocation4 + $0x1], 1 }

</bundles_post_ra>
